<compile_context>
chip_gen: v6e
topology: v6e:2x2x1
jax: 0.10.0
libtpu: 0.0.40
codegen_flags: <defaults>
</compile_context>

<pallas_src>
import functools

import jax
import jax.numpy as jnp
import numpy as np
from jax import lax
from jax.experimental import pallas as pl
from jax.experimental.pallas import tpu as pltpu

LANE = 128
ROW_ALIGN = 64           # multiple of f32(8)/bf16(16)/int8(32) sublane tiles and of the fold
ACC_ROWS = 64            # accumulator rows per split: 8 independent f32 vreg add chains
EPS = float(np.finfo(float).eps)   # matches np.finfo(float).eps in the torch code


def _round_down(a, b):
    return (a // b) * b


def _num_tc_splits():
    """2 on dual-TensorCore chips (v7x), 1 elsewhere; never raises."""
    try:
        kind = jax.devices()[0].device_kind.lower()
    except Exception:
        return 1
    return 2 if "v7" in kind else 1


def _vmem_input_budget_bytes():
    """Bytes allowed for the double-buffered input tiles (stay inside the
    default scoped VMEM: 16 MiB on v5e, 32 MiB on v6e/v7x)."""
    try:
        kind = jax.devices()[0].device_kind.lower()
    except Exception:
        return 12 * 1024 * 1024
    if "v6" in kind or "v7" in kind:
        return 24 * 1024 * 1024
    return 12 * 1024 * 1024


def _focal_kernel(x_ref, t_ref, out_ref, *, alpha, gamma, block_rows, acc_rows,
                  blocks_per_split, valid_rows):
    c = pl.program_id(0)   # split (parallel) axis
    i = pl.program_id(1)   # row-block (arbitrary / reduction) axis

    # Output block is resident across the inner axis -> it IS the accumulator.
    @pl.when(i == 0)
    def _():
        out_ref[...] = jnp.zeros_like(out_ref)

    neg_alpha = jnp.float32(-alpha)
    alpha_m1 = jnp.float32(alpha - 1.0)
    gamma_is_int = float(gamma) == float(int(gamma))

    def fold(x, is_pos):
        p_t = jnp.where(is_pos, x, 1.0 - x)
        one_minus = 1.0 - p_t
        if gamma_is_int:
            modulator = one_minus ** int(gamma)            # integer_pow -> VPU mults
        else:
            modulator = one_minus ** jnp.float32(gamma)    # general pow fallback
        # -1 sign and alpha weighting folded into one constant select.
        w = jnp.where(is_pos, neg_alpha, alpha_m1)
        fl = modulator * jnp.log(p_t + EPS) * w
        # Fold rows into a lane-dense (acc_rows, 128) slab: pure elementwise
        # vreg adds spread over acc_rows/8 independent chains.
        return jnp.sum(fl.reshape(-1, acc_rows, LANE), axis=0)

    # Global row base stays UNCLAMPED so clamped duplicate blocks of the split
    # axis (whose DMA re-reads the last real block) mask to exactly zero.
    base_row = (c * blocks_per_split + i) * block_rows
    needs_mask = base_row + block_rows > valid_rows

    @pl.when(jnp.logical_not(needs_mask))
    def _():
        # Fast path: interior block, no row mask (~5 fewer VPU ops/element).
        out_ref[...] += fold(x_ref[...].astype(jnp.float32), t_ref[...] == 1)

    @pl.when(needs_mask)
    def _():
        # Tail / duplicate block: sanitize BEFORE the log so garbage rows of a
        # partial tile never produce NaN; masked rows contribute exactly 0.
        row_ids = base_row + lax.broadcasted_iota(jnp.int32, (block_rows, LANE), 0)
        valid = row_ids < valid_rows
        x = jnp.where(valid, x_ref[...].astype(jnp.float32), 0.0)
        is_pos = jnp.logical_and(t_ref[...] == 1, valid)
        out_ref[...] += fold(x, is_pos)


def _focal_elements(x, t, alpha, gamma):
    """Plain-JAX per-element focal loss (used only for the <128-elem ragged tail)."""
    xf = x.astype(jnp.float32)
    is_pos = t == 1
    p_t = jnp.where(is_pos, xf, 1.0 - xf)
    fl = -1.0 * (1.0 - p_t) ** gamma * jnp.log(p_t + EPS)
    return jnp.where(is_pos, fl * alpha, fl * (1.0 - alpha))


def focal_loss(x, target, *, alpha=1.0, gamma=2.0, reduction="mean",
               block_rows=8192):
    """Focal loss computed with a Pallas TPU kernel ('mean' or 'sum')."""
    assert x.shape == target.shape
    if reduction not in ("mean", "sum"):
        # TODO(synk): reduction='none' (full elementwise output) not implemented.
        raise NotImplementedError(f"Reduction {reduction} not implemented.")
    n_true = int(np.prod(x.shape))

    x_flat = jnp.ravel(x)                 # stream native dtype; upcast in-kernel
    t_flat = jnp.ravel(target)
    if t_flat.dtype == jnp.bool_:
        t_flat = t_flat.astype(jnp.int8)  # narrow target stream (1 B/elem)

    # No whole-array pad copy: the <128-element ragged tail is plain JAX.
    rem = n_true % LANE
    n_main = n_true - rem
    tail = (jnp.sum(_focal_elements(x_flat[n_main:], t_flat[n_main:], alpha, gamma))
            if rem else jnp.float32(0.0))

    if n_main == 0:
        total = tail
    else:
        m_rows = n_main // LANE
        x2 = (x_flat[:n_main] if rem else x_flat).reshape(m_rows, LANE)
        t2 = (t_flat[:n_main] if rem else t_flat).reshape(m_rows, LANE)

        # Large row tiles (HBM-streaming): as big as the double-buffered input
        # budget allows (2 inputs x 2 pipeline buffers).
        bytes_per_row = LANE * (x2.dtype.itemsize + t2.dtype.itemsize)
        max_rows_vmem = max(
            ROW_ALIGN,
            _round_down(_vmem_input_budget_bytes() // (2 * bytes_per_row), ROW_ALIGN))
        req_rows = max(ROW_ALIGN,
                       _round_down(min(int(block_rows), max_rows_vmem), ROW_ALIGN))
        if m_rows >= ROW_ALIGN:
            blk = min(req_rows, _round_down(m_rows, ROW_ALIGN))
        else:
            blk = m_rows   # single block equal to the full dim (legal for any dtype)

        if blk % ACC_ROWS == 0:
            acc_rows = ACC_ROWS
        elif blk % 8 == 0:
            acc_rows = 8
        else:
            acc_rows = 1

        g_blocks = pl.cdiv(m_rows, blk)
        nsplit = _num_tc_splits()
        if g_blocks < 2 or acc_rows < 8:
            nsplit = 1
        blocks_per_split = pl.cdiv(g_blocks, nsplit)

        if nsplit == 1:
            in_map = lambda c, i: (i, 0)
        else:
            # Clamp so DMAs never start past the array end; clamped duplicate
            # blocks are fully masked in-kernel (base_row stays unclamped).
            in_map = lambda c, i: (jnp.minimum(c * blocks_per_split + i,
                                               g_blocks - 1), 0)

        kernel = functools.partial(
            _focal_kernel,
            alpha=float(alpha), gamma=float(gamma),
            block_rows=blk, acc_rows=acc_rows,
            blocks_per_split=blocks_per_split, valid_rows=m_rows)

        in_bytes = n_main * (x2.dtype.itemsize + t2.dtype.itemsize)
        cost = pl.CostEstimate(
            flops=10 * n_main,
            transcendentals=n_main,
            bytes_accessed=int(in_bytes) + nsplit * acc_rows * LANE * 4)

        partials = pl.pallas_call(
            kernel,
            out_shape=jax.ShapeDtypeStruct((nsplit * acc_rows, LANE), jnp.float32),
            grid_spec=pltpu.PrefetchScalarGridSpec(
                num_scalar_prefetch=0,
                grid=(nsplit, blocks_per_split),
                in_specs=[
                    pl.BlockSpec((blk, LANE), in_map),
                    pl.BlockSpec((blk, LANE), in_map),
                ],
                out_specs=pl.BlockSpec((acc_rows, LANE), lambda c, i: (c, 0)),
            ),
            compiler_params=pltpu.CompilerParams(
                dimension_semantics=("parallel", "arbitrary"),
            ),
            cost_estimate=cost,
        )(x2, t2)

        # Single tiny cross-lane reduce, outside the kernel.
        total = jnp.sum(partials) + tail

    if reduction == "mean":
        return total / jnp.float32(n_true)
    return total


def focal_loss_ref(x, target, alpha=1.0, gamma=2.0):
    p_t = jnp.where(target == 1.0, x, 1.0 - x)
    fl = -1.0 * (1.0 - p_t) ** gamma * jnp.log(p_t + EPS)
    fl = jnp.where(target == 1.0, fl * alpha, fl * (1.0 - alpha))
    return jnp.mean(fl)


if __name__ == "__main__":
    key = jax.random.PRNGKey(0)
    kx, kt = jax.random.split(key)

    # Small NCHW-shaped predictions (probabilities in (0,1)) and binary targets.
    shape = (2, 4, 16, 16)
    x = jax.nn.sigmoid(jax.random.normal(kx, shape, dtype=jnp.float32))
    target = (jax.random.uniform(kt, shape) > 0.5).astype(jnp.float32)

    out = focal_loss(x, target, alpha=1.0, gamma=2.0)
    out = jax.block_until_ready(out)

    ref = focal_loss_ref(x, target, alpha=1.0, gamma=2.0)
    np.testing.assert_allclose(np.asarray(out), np.asarray(ref), rtol=1e-5, atol=1e-6)

    print("KERNEL_OK")
</pallas_src>

<mosaic_0001>
module attributes {stable_mosaic.version = 11 : i64} {
  func.func @_focal_kernel(%arg0: i32, %arg1: i32, %arg2: memref<16x128xf32, #tpu.memory_space<vmem>>, %arg3: memref<16x128xf32, #tpu.memory_space<vmem>>, %arg4: memref<8x128xf32, #tpu.memory_space<vmem>>) attributes {dimension_semantics = [#tpu.dimension_semantics<parallel>, #tpu.dimension_semantics<arbitrary>], iteration_bounds = array<i64: 1, 1>, scalar_prefetch = 0 : i64, scratch_operands = 0 : i64, tpu.core_type = #tpu.core_type<tc>, window_params = [{transform_indices = @transform_0, window_bounds = array<i64: 16, 128>}, {transform_indices = @transform_1, window_bounds = array<i64: 16, 128>}, {transform_indices = @transform_2, window_bounds = array<i64: 8, 128>}]} {
    %c0_i32 = arith.constant 0 : i32
    %0 = arith.cmpi eq, %arg1, %c0_i32 : i32
    %1 = arith.extui %0 : i1 to i32
    %c0_i32_0 = arith.constant 0 : i32
    %2 = arith.cmpi ne, %1, %c0_i32_0 : i32
    scf.if %2 {
      %cst_8 = arith.constant 0.000000e+00 : f32
      %13 = vector.broadcast %cst_8 : f32 to vector<8x128xf32>
      %c0 = arith.constant 0 : index
      %c0_9 = arith.constant 0 : index
      %14 = vector.load %arg4[%c0, %c0_9] : memref<8x128xf32, #tpu.memory_space<vmem>>, vector<8x128xf32>
      tpu.vector_store %arg4[%c0, %c0_9], %13 {strides = array<i32>} : memref<8x128xf32, #tpu.memory_space<vmem>>, vector<8x128xf32>,
    } else {
    }
    %c1_i32 = arith.constant 1 : i32
    %3 = arith.muli %arg0, %c1_i32 : i32
    %4 = arith.addi %3, %arg1 : i32
    %c16_i32 = arith.constant 16 : i32
    %5 = arith.muli %4, %c16_i32 : i32
    %c16_i32_1 = arith.constant 16 : i32
    %6 = arith.addi %5, %c16_i32_1 : i32
    %c16_i32_2 = arith.constant 16 : i32
    %7 = arith.cmpi sgt, %6, %c16_i32_2 : i32
    %true = arith.constant true
    %8 = arith.xori %7, %true : i1
    %9 = arith.extui %8 : i1 to i32
    %cst = arith.constant -1.000000e+00 : f32
    %cst_3 = arith.constant 0.000000e+00 : f32
    %c0_i32_4 = arith.constant 0 : i32
    %10 = arith.cmpi ne, %9, %c0_i32_4 : i32
    scf.if %10 {
      %c0 = arith.constant 0 : index
      %c0_8 = arith.constant 0 : index
      %13 = vector.load %arg4[%c0, %c0_8] : memref<8x128xf32, #tpu.memory_space<vmem>>, vector<8x128xf32>
      %c0_9 = arith.constant 0 : index
      %c0_10 = arith.constant 0 : index
      %14 = vector.load %arg2[%c0_9, %c0_10] : memref<16x128xf32, #tpu.memory_space<vmem>>, vector<16x128xf32>
      %c0_11 = arith.constant 0 : index
      %c0_12 = arith.constant 0 : index
      %15 = vector.load %arg3[%c0_11, %c0_12] : memref<16x128xf32, #tpu.memory_space<vmem>>, vector<16x128xf32>
      %cst_13 = arith.constant 1.000000e+00 : f32
      %16 = vector.broadcast %cst_13 : f32 to vector<16x128xf32>
      %17 = arith.cmpf oeq, %15, %16 : vector<16x128xf32>
      %cst_14 = arith.constant 1.000000e+00 : f32
      %18 = vector.broadcast %cst_14 : f32 to vector<16x128xf32>
      %19 = arith.subf %18, %14 : vector<16x128xf32>
      %20 = arith.select %17, %14, %19 : vector<16x128xi1>, vector<16x128xf32>
      %cst_15 = arith.constant 1.000000e+00 : f32
      %21 = vector.broadcast %cst_15 : f32 to vector<16x128xf32>
      %22 = arith.subf %21, %20 : vector<16x128xf32>
      %23 = arith.mulf %22, %22 : vector<16x128xf32>
      %24 = vector.broadcast %cst : f32 to vector<16x128xf32>
      %25 = vector.broadcast %cst_3 : f32 to vector<16x128xf32>
      %26 = arith.select %17, %24, %25 : vector<16x128xi1>, vector<16x128xf32>
      %cst_16 = arith.constant 2.22044605E-16 : f32
      %27 = vector.broadcast %cst_16 : f32 to vector<16x128xf32>
      %28 = arith.addf %20, %27 : vector<16x128xf32>
      %29 = math.log %28 : vector<16x128xf32>
      %30 = arith.mulf %23, %29 : vector<16x128xf32>
      %31 = arith.mulf %30, %26 : vector<16x128xf32>
      %32 = vector.shape_cast %31 : vector<16x128xf32> to vector<2x8x128xf32>
      %cst_17 = arith.constant dense<0.000000e+00> : vector<8x128xf32>
      %33 = vector.multi_reduction <add>, %32, %cst_17 [0] : vector<2x8x128xf32> to vector<8x128xf32>
      %34 = arith.addf %13, %33 : vector<8x128xf32>
      %c0_18 = arith.constant 0 : index
      %c0_19 = arith.constant 0 : index
      %35 = vector.load %arg4[%c0_18, %c0_19] : memref<8x128xf32, #tpu.memory_space<vmem>>, vector<8x128xf32>
      tpu.vector_store %arg4[%c0_18, %c0_19], %34 {strides = array<i32>} : memref<8x128xf32, #tpu.memory_space<vmem>>, vector<8x128xf32>,
    } else {
    }
    %11 = arith.extui %7 : i1 to i32
    %cst_5 = arith.constant -1.000000e+00 : f32
    %cst_6 = arith.constant 0.000000e+00 : f32
    %c0_i32_7 = arith.constant 0 : i32
    %12 = arith.cmpi ne, %11, %c0_i32_7 : i32
    scf.if %12 {
      %13 = tpu.iota {dimensions = array<i32: 0>} : vector<16x128xi32>
      %14 = vector.broadcast %5 : i32 to vector<16x128xi32>
      %15 = arith.addi %14, %13 : vector<16x128xi32>
      %c16_i32_8 = arith.constant 16 : i32
      %16 = vector.broadcast %c16_i32_8 : i32 to vector<16x128xi32>
      %17 = arith.cmpi slt, %15, %16 : vector<16x128xi32>
      %c0 = arith.constant 0 : index
      %c0_9 = arith.constant 0 : index
      %18 = vector.load %arg2[%c0, %c0_9] : memref<16x128xf32, #tpu.memory_space<vmem>>, vector<16x128xf32>
      %cst_10 = arith.constant 0.000000e+00 : f32
      %19 = vector.broadcast %cst_10 : f32 to vector<16x128xf32>
      %20 = arith.select %17, %18, %19 : vector<16x128xi1>, vector<16x128xf32>
      %c0_11 = arith.constant 0 : index
      %c0_12 = arith.constant 0 : index
      %21 = vector.load %arg3[%c0_11, %c0_12] : memref<16x128xf32, #tpu.memory_space<vmem>>, vector<16x128xf32>
      %cst_13 = arith.constant 1.000000e+00 : f32
      %22 = vector.broadcast %cst_13 : f32 to vector<16x128xf32>
      %23 = arith.cmpf oeq, %21, %22 : vector<16x128xf32>
      %24 = arith.andi %23, %17 : vector<16x128xi1>
      %c0_14 = arith.constant 0 : index
      %c0_15 = arith.constant 0 : index
      %25 = vector.load %arg4[%c0_14, %c0_15] : memref<8x128xf32, #tpu.memory_space<vmem>>, vector<8x128xf32>
      %cst_16 = arith.constant 1.000000e+00 : f32
      %26 = vector.broadcast %cst_16 : f32 to vector<16x128xf32>
      %27 = arith.subf %26, %20 : vector<16x128xf32>
      %28 = arith.select %24, %20, %27 : vector<16x128xi1>, vector<16x128xf32>
      %cst_17 = arith.constant 1.000000e+00 : f32
      %29 = vector.broadcast %cst_17 : f32 to vector<16x128xf32>
      %30 = arith.subf %29, %28 : vector<16x128xf32>
      %31 = arith.mulf %30, %30 : vector<16x128xf32>
      %32 = vector.broadcast %cst_5 : f32 to vector<16x128xf32>
      %33 = vector.broadcast %cst_6 : f32 to vector<16x128xf32>
      %34 = arith.select %24, %32, %33 : vector<16x128xi1>, vector<16x128xf32>
      %cst_18 = arith.constant 2.22044605E-16 : f32
      %35 = vector.broadcast %cst_18 : f32 to vector<16x128xf32>
      %36 = arith.addf %28, %35 : vector<16x128xf32>
      %37 = math.log %36 : vector<16x128xf32>
      %38 = arith.mulf %31, %37 : vector<16x128xf32>
      %39 = arith.mulf %38, %34 : vector<16x128xf32>
      %40 = vector.shape_cast %39 : vector<16x128xf32> to vector<2x8x128xf32>
      %cst_19 = arith.constant dense<0.000000e+00> : vector<8x128xf32>
      %41 = vector.multi_reduction <add>, %40, %cst_19 [0] : vector<2x8x128xf32> to vector<8x128xf32>
      %42 = arith.addf %25, %41 : vector<8x128xf32>
      %c0_20 = arith.constant 0 : index
      %c0_21 = arith.constant 0 : index
      %43 = vector.load %arg4[%c0_20, %c0_21] : memref<8x128xf32, #tpu.memory_space<vmem>>, vector<8x128xf32>
      tpu.vector_store %arg4[%c0_20, %c0_21], %42 {strides = array<i32>} : memref<8x128xf32, #tpu.memory_space<vmem>>, vector<8x128xf32>,
    } else {
    }
    return
  }
  func.func @transform_0(%arg0: i32, %arg1: i32) -> (i32, i32) {
    %c0_i32 = arith.constant 0 : i32
    %c0_i32_0 = arith.constant 0 : i32
    return %arg1, %c0_i32 : i32, i32
  }
  func.func @transform_1(%arg0: i32, %arg1: i32) -> (i32, i32) {
    %c0_i32 = arith.constant 0 : i32
    %c0_i32_0 = arith.constant 0 : i32
    return %arg1, %c0_i32 : i32, i32
  }
  func.func @transform_2(%arg0: i32, %arg1: i32) -> (i32, i32) {
    %c0_i32 = arith.constant 0 : i32
    %c0_i32_0 = arith.constant 0 : i32
    return %arg0, %c0_i32 : i32, i32
  }
}

</mosaic_0001>

<bundles_post_ra>
// kernel: tpu_custom_call.1
= control target key start
LH: loop header
LB: loop body
LE: loop exit
PB: predicated region body
PF: predicated region fallthrough
CT: control target
= control target key end

     0   :  { %7 = vsyncpa [#allocation3], 0  ;;  %s253_s0 = inlined_call_operand.hbm [shape: f32[16,128], index: 0, kind: input, shape index: {}]   ;;  %s254_s1 = inlined_call_operand.hbm [shape: f32[16,128], index: 1, kind: input, shape index: {}]   ;;  %s255_s2 = inlined_call_operand.hbm [shape: f32[8,128], index: 2, kind: output, shape index: {}]  }
   0x1   :  { %8 = vsyncpa [#allocation6], 0 }
   0x2   :  { %9 = vsyncpa [#allocation4], 0  ;;  %s219_s9 = smov [#allocation2]  }
   0x3   :  { %s15_s10 = sshll.u32 %s219_s9, 4  ;;  %s16_s10 = int_to_ptr.vmem [resolvable:$true] %s15_s10 }
   0x4   :  { %s161_s11 = scalar_lea.vmem %s16_s10, 256  ;;  %p166_p1 = scmp.lt.s32.totalorder %s16_s10, %s16_s10 }
   0x5   :  { %p162_p0 = scmp.ne.s32.totalorder %s16_s10, %s161_s11  ;;  %p167_p2 = scmp.lt.s32.totalorder %s161_s11, %s161_s11 }
   0x7   :  { %p168_p3 = por %p167_p2, %p166_p1 }
   0x9   :  { %p169_p4 = pnand %p168_p3, %p162_p0 }
   0xb   :  { %172 = shalt.err (!%p169_p4)
}
   0xc   :  { %s220_s12 = smov 128   ;;  %s221_s13 = smov 8  }
   0xd   :  { %21 = dma.hbm_to_vmem [thread:$0]  %s253_s0, 256, %s16_s10, [#allocation3], %s220_s12, %s220_s12, %s221_s13  }
   0xe   :  { %s222_s16 = smov [#allocation5]  }
   0xf   :  { %s27_s17 = sshll.u32 %s222_s16, 4  ;;  %s28_s17 = int_to_ptr.vmem [resolvable:$true] %s27_s17 }
  0x10   :  { %s181_s18 = scalar_lea.vmem %s28_s17, 256  ;;  %p186_p6 = scmp.lt.s32.totalorder %s28_s17, %s28_s17 }
  0x11   :  { %p182_p5 = scmp.ne.s32.totalorder %s28_s17, %s181_s18  ;;  %p187_p7 = scmp.lt.s32.totalorder %s181_s18, %s181_s18 }
  0x13   :  { %p188_p8 = por %p187_p7, %p186_p6 }
  0x15   :  { %p189_p9 = pnand %p188_p8, %p182_p5 }
  0x17   :  { %192 = shalt.err (!%p189_p9)
}
  0x18   :  { %33 = dma.hbm_to_vmem [thread:$0]  %s254_s1, 256, %s28_s17, [#allocation6], %s220_s12, %s220_s12, %s221_s13  }
  0x19   :  { %213 = dma.done.wait [#allocation3], 256  }
  0x1a   :  { %214 = vsyncadd [#allocation3], 4294967040 }
  0x1b   :  { %215 = dma.done.wait [#allocation6], 256  }
  0x1c   :  { %216 = vsyncadd [#allocation6], 4294967040  ;;  %v98_v0 = vld [vmem:[#allocation2] sm:$0xff]  ;;  %v99_v1 = vld [vmem:[#allocation2 + $0x8] sm:$0xff]  ;;  %v223_v17 = vmov 0.0   ;;  %s224_s0 = smov [#allocation7]  }
  0x1d   :  { %v100_v2 = vld [vmem:[#allocation5] sm:$0xff]  ;;  %v101_v3 = vld [vmem:[#allocation5 + $0x8] sm:$0xff]  ;;  %v104_v4 = vsub.f32 1.0, %v98_v0  ;;  %v105_v5 = vsub.f32 1.0, %v99_v1  ;;  %s133_s1 = sshll.u32 %s224_s0, 4  ;;  %s134_s1 = int_to_ptr.vmem [resolvable:$true] %s133_s1 }
  0x1e   :  { %vm102_vm0 = vcmp.eq.f32.partialorder %v100_v2, 1.0  ;;  %vm103_vm1 = vcmp.eq.f32.partialorder %v101_v3, 1.0  ;;  %s193_s21 = scalar_lea.vmem %s134_s1, 128  ;;  %p198_p11 = scmp.lt.s32.totalorder %s134_s1, %s134_s1 }
  0x1f   :  { %v106_v6 = vsel %vm102_vm0, %v98_v0, %v104_v4  ;;  %v107_v7 = vsel %vm103_vm1, %v99_v1, %v105_v5  ;;  %v112_v18 = vsel %vm102_vm0, -1.0, %v223_v17  ;;  %v113_v20 = vsel %vm103_vm1, -1.0, %v223_v17  ;;  %p194_p10 = scmp.ne.s32.totalorder %s134_s1, %s193_s21  ;;  %p199_p12 = scmp.lt.s32.totalorder %s193_s21, %s193_s21 }
  0x20   :  { %v114_v8 = vadd.f32 2.220446e-16, %v106_v6  ;;  %v115_v9 = vadd.f32 2.220446e-16, %v107_v7  ;;  %v108_v10 = vsub.f32 1.0, %v106_v6  ;;  %v109_v11 = vsub.f32 1.0, %v107_v7 }
  0x21   :  { %p200_p13 = por %p199_p12, %p198_p11 }
  0x22   :  { %149 = vlog2.f32 %v114_v8  ;;  %v110_v12 = vmul.f32 %v108_v10, %v108_v10  ;;  %v111_v14 = vmul.f32 %v109_v11, %v109_v11 }
  0x23   :  { %151 = vlog2.f32 %v115_v9  ;;  %p201_p0 = pnand %p200_p13, %p194_p10 }
  0x2f   :  { %v150_v13 = vpop.eup %149 }
  0x30   :  { %v152_v15 = vpop.eup %151  ;;  %v117_v16 = vmul.f32 0.6931472, %v150_v13 }
  0x31   :  { %v119_v19 = vmul.f32 0.6931472, %v152_v15 }
  0x32   :  { %v120_v21 = vmul.f32 %v117_v16, %v110_v12 }
  0x33   :  { %v121_v22 = vmul.f32 %v119_v19, %v111_v14 }
  0x34   :  { %v122_v23 = vmul.f32 %v120_v21, %v112_v18 }
  0x35   :  { %v123_v24 = vmul.f32 %v121_v22, %v113_v20 }
  0x37   :  { %v124_v25 = vadd.f32 %v123_v24, %v122_v23 }
  0x39   :  { %126 = vst [vmem:[#allocation7] sm:$0xff] %v124_v25 }
  0x3a   :  { %204 = shalt.err (!%p201_p0)
}
  0x3b   :  { %136 = dma.vmem_to_hbm [thread:$0]  %s134_s1, 128, %s255_s2, [#allocation4]  }
  0x3c   :  { %217 = dma.done.wait [#allocation4], 128  }
  0x3d   :  { %218 = vsyncadd [#allocation4], 4294967168 }
  0x3e   :  { %140 = vsyncpa [#allocation3], 1 }
  0x3f   :  { %141 = vsyncpa [#allocation6], 1 }
  0x40   :  { %142 = vsyncpa [#allocation4], 1 }

</bundles_post_ra>
